<compile_context>
chip_gen: v7x
topology: tpu7x:2x2x1
jax: 0.10.0
libtpu: 0.0.40
codegen_flags: <defaults>
</compile_context>

<pallas_src>
import jax
import jax.numpy as jnp
from jax.experimental import pallas as pl
from jax.experimental.pallas import tpu as pltpu


def _round_up_128(v):
    return ((v + 127) // 128) * 128


def _choose_graphs_per_step(b, n, target_rows=256):
    """Graphs per grid step: aim for ~256 MXU rows, keep >=2 grid steps when possible."""
    gb = max(1, min(b, max(1, target_rows // max(n, 1))))
    if b >= 2:
        gb = min(gb, -(-b // 2))  # ceil(b/2) -> at least 2 steps (v7x: 2 TensorCores)
    return gb


def topo_graph_kernel(x_ref, adjt_ref, w1t_ref, b1_ref, w2t_ref, b2_ref, out_ref):
    gb, n, fp = x_ref.shape
    ep = w1t_ref.shape[1]

    # ---- fc1 + ReLU over all GB*N rows at once (bf16 MXU operands, f32 acc) ----
    x2 = x_ref[...].reshape(gb * n, fp)                     # lane dim unchanged -> free
    h = jnp.dot(x2, w1t_ref[...],
                preferred_element_type=jnp.float32) + b1_ref[...]
    h = jnp.maximum(h, 0.0).astype(jnp.bfloat16)            # fused relu + bf16 downcast

    # ---- GCN linear (weight applied before aggregation, like PyG) --------------
    hw = jnp.dot(h, w2t_ref[...],
                 preferred_element_type=jnp.float32)        # [gb*n, ep] f32
    hw = hw.reshape(gb, n, ep)

    # ---- degree / normalization (Ã^T built in wrapper; XLU lane reduction) -----
    at = adjt_ref[...]                                      # [gb, n, n] bf16, Ã^T (0/1)
    deg = jnp.sum(at.astype(jnp.float32), axis=-1, keepdims=True)   # [gb, n, 1] f32 acc
    dinv = jnp.where(deg > 0.0, jax.lax.rsqrt(deg), 0.0)

    # ---- folded normalization + aggregation ------------------------------------
    #   out[c,:] = dinv[c] * Σ_r Ã[r,c] * (dinv[r] * hw[r,:]) + b2
    #   Ã[r,c] = Ã^T[c,r]  ->  contract LHS last dim (MXU-native), batched over gb.
    hw_scaled = (hw * dinv).astype(jnp.bfloat16)            # [gb, n, ep]
    y = jax.lax.dot_general(at, hw_scaled,
                            dimension_numbers=(((2,), (1,)), ((0,), (0,))),
                            preferred_element_type=jnp.float32)     # [gb, n, ep]
    out_ref[...] = (y * dinv + b2_ref[...]).astype(out_ref.dtype)


def topo_graph_forward_batched(x_b, adj_b, w1, b1, w2, b2):
    """x_b: [B,N,F]; adj_b: [B,N,N]; w1: [E,F]; b1: [E]; w2: [E,E]; b2: [E] -> [B,N,E]."""
    b_sz, n, f = x_b.shape
    e = w1.shape[0]
    fp = _round_up_128(f)
    ep = _round_up_128(e)

    gb = _choose_graphs_per_step(b_sz, n)
    bp = ((b_sz + gb - 1) // gb) * gb
    n_steps = bp // gb

    # plain-JAX glue (XLA fuses these): zero-pad lane dims to 128 and the batch to a
    # multiple of GB, binarize + force self-loops + transpose the adjacency, cast MXU
    # operands to bf16 (f32 accumulation happens in-kernel).
    x_p = jnp.pad(x_b.astype(jnp.float32),
                  ((0, bp - b_sz), (0, 0), (0, fp - f))).astype(jnp.bfloat16)
    eye = jnp.eye(n, dtype=jnp.bool_)
    a_tilde_t = jnp.swapaxes((adj_b != 0) | eye[None], 1, 2)          # Ã^T, bool
    adjt = jnp.pad(a_tilde_t.astype(jnp.bfloat16),
                   ((0, bp - b_sz), (0, 0), (0, 0)))                  # padded graphs: deg=0
    w1t = jnp.pad(w1.T.astype(jnp.float32),
                  ((0, fp - f), (0, ep - e))).astype(jnp.bfloat16)
    w2t = jnp.pad(w2.T.astype(jnp.float32),
                  ((0, ep - e), (0, ep - e))).astype(jnp.bfloat16)
    b1p = jnp.pad(b1.astype(jnp.float32), (0, ep - e)).reshape(1, ep)
    b2p = jnp.pad(b2.astype(jnp.float32), (0, ep - e)).reshape(1, ep)

    flops = 2 * bp * n * (fp * ep + ep * ep + n * ep)
    bytes_accessed = (x_p.size * 2 + adjt.size * 2
                      + n_steps * (w1t.size * 2 + w2t.size * 2
                                   + (b1p.size + b2p.size) * 4)
                      + bp * n * ep * 4)

    out_p = pl.pallas_call(
        topo_graph_kernel,
        out_shape=jax.ShapeDtypeStruct((bp, n, ep), jnp.float32),
        grid=(n_steps,),
        in_specs=[
            pl.BlockSpec((gb, n, fp), lambda g: (g, 0, 0)),   # x      (bf16)
            pl.BlockSpec((gb, n, n), lambda g: (g, 0, 0)),    # Ã^T    (bf16, 0/1)
            pl.BlockSpec((fp, ep), lambda g: (0, 0)),         # W1^T   (bf16)
            pl.BlockSpec((1, ep), lambda g: (0, 0)),          # b1     (f32)
            pl.BlockSpec((ep, ep), lambda g: (0, 0)),         # W2^T   (bf16)
            pl.BlockSpec((1, ep), lambda g: (0, 0)),          # b2     (f32)
        ],
        out_specs=pl.BlockSpec((gb, n, ep), lambda g: (g, 0, 0)),
        compiler_params=pltpu.CompilerParams(
            dimension_semantics=("parallel",)),
        cost_estimate=pl.CostEstimate(flops=flops,
                                      transcendentals=bp * n,
                                      bytes_accessed=bytes_accessed),
    )(x_p, adjt, w1t, b1p, w2t, b2p)
    return out_p[:b_sz, :, :e]


def topo_graph_forward(x, adj, w1, b1, w2, b2):
    """Module-equivalent forward: x [N,F], adj [1,1,N,N] -> [N, num_edge]."""
    return topo_graph_forward_batched(x[None], adj[0, 0][None], w1, b1, w2, b2)[0]


def _reference_single(x, a, w1, b1, w2, b2):
    """Pure-JAX f32 reference mirroring PyTorch/PyG semantics (single graph)."""
    h = jax.nn.relu(x @ w1.T + b1)
    n = a.shape[0]
    a_tilde = jnp.maximum(jnp.where(a != 0, 1.0, 0.0), jnp.eye(n))
    deg = a_tilde.sum(axis=0)                       # column degree (scatter on col)
    dinv = jnp.where(deg > 0, deg ** -0.5, 0.0)
    a_norm = dinv[:, None] * a_tilde * dinv[None, :]
    return a_norm.T @ (h @ w2.T) + b2


if __name__ == "__main__":
    key = jax.random.PRNGKey(0)
    N, F, E, B = 16, 64, 32, 16     # N nodes, topo_feature=64, num_edge=32, 16 graphs

    k_x, k_a, k_w1, k_b1, k_w2, k_b2 = jax.random.split(key, 6)
    x_b = jax.random.normal(k_x, (B, N, F), dtype=jnp.float32)
    up = (jax.random.uniform(k_a, (B, N, N)) > 0.6).astype(jnp.float32)
    adj_b = jnp.maximum(up, jnp.swapaxes(up, 1, 2)) * (1.0 - jnp.eye(N))  # sym, zero diag

    # deterministic parameter init (fc1 + GCNConv weights / biases)
    w1 = jax.random.normal(k_w1, (E, F), dtype=jnp.float32) * (1.0 / F) ** 0.5
    b1 = jax.random.normal(k_b1, (E,), dtype=jnp.float32) * 0.01
    w2 = jax.random.normal(k_w2, (E, E), dtype=jnp.float32) * (1.0 / E) ** 0.5
    b2 = jnp.zeros((E,), dtype=jnp.float32)  # PyG GCNConv bias init = zeros

    # --- module-signature path (single graph, adj shaped [1,1,N,N]) ----------
    adj_4d = adj_b[0][None, None]
    out1 = jax.block_until_ready(topo_graph_forward(x_b[0], adj_4d, w1, b1, w2, b2))
    ref1 = _reference_single(x_b[0], adj_b[0], w1, b1, w2, b2)
    assert out1.shape == (N, E)
    # bf16 MXU operands with f32 accumulation -> ~1e-2-level agreement vs f32 reference
    assert jnp.allclose(out1, ref1, atol=3e-2, rtol=3e-2), "single-graph mismatch"

    # --- batched path (GB graphs per grid step, 2 parallel steps) ------------
    out_b = jax.block_until_ready(
        topo_graph_forward_batched(x_b, adj_b, w1, b1, w2, b2))
    ref_b = jax.vmap(lambda xg, ag: _reference_single(xg, ag, w1, b1, w2, b2))(x_b, adj_b)
    assert out_b.shape == (B, N, E)
    assert jnp.allclose(out_b, ref_b, atol=3e-2, rtol=3e-2), "batched mismatch"

    print("KERNEL_OK")
</pallas_src>

<mosaic_0001>
module attributes {stable_mosaic.version = 11 : i64} {
  func.func @topo_graph_kernel(%arg0: i32, %arg1: memref<1x16x128xbf16, #tpu.memory_space<vmem>>, %arg2: memref<1x16x16xbf16, #tpu.memory_space<vmem>>, %arg3: memref<128x128xbf16, #tpu.memory_space<vmem>>, %arg4: memref<1x128xf32, #tpu.memory_space<vmem>>, %arg5: memref<128x128xbf16, #tpu.memory_space<vmem>>, %arg6: memref<1x128xf32, #tpu.memory_space<vmem>>, %arg7: memref<1x16x128xf32, #tpu.memory_space<vmem>>) attributes {dimension_semantics = [#tpu.dimension_semantics<parallel>], iteration_bounds = array<i64: 1>, scalar_prefetch = 0 : i64, scratch_operands = 0 : i64, tpu.core_type = #tpu.core_type<tc>, window_params = [{transform_indices = @transform_0, window_bounds = array<i64: 1, 16, 128>}, {transform_indices = @transform_1, window_bounds = array<i64: 1, 16, 16>}, {pipeline_mode = #tpu.pipeline_mode<synchronous>, transform_indices = @transform_2, window_bounds = array<i64: 128, 128>}, {pipeline_mode = #tpu.pipeline_mode<synchronous>, transform_indices = @transform_3, window_bounds = array<i64: 1, 128>}, {pipeline_mode = #tpu.pipeline_mode<synchronous>, transform_indices = @transform_4, window_bounds = array<i64: 128, 128>}, {pipeline_mode = #tpu.pipeline_mode<synchronous>, transform_indices = @transform_5, window_bounds = array<i64: 1, 128>}, {transform_indices = @transform_6, window_bounds = array<i64: 1, 16, 128>}]} {
    %c0 = arith.constant 0 : index
    %c0_0 = arith.constant 0 : index
    %c0_1 = arith.constant 0 : index
    %0 = vector.load %arg1[%c0, %c0_0, %c0_1] : memref<1x16x128xbf16, #tpu.memory_space<vmem>>, vector<1x16x128xbf16>
    %1 = vector.shape_cast %0 : vector<1x16x128xbf16> to vector<16x128xbf16>
    %c0_2 = arith.constant 0 : index
    %c0_3 = arith.constant 0 : index
    %2 = vector.load %arg3[%c0_2, %c0_3] : memref<128x128xbf16, #tpu.memory_space<vmem>>, vector<128x128xbf16>
    %cst = arith.constant dense<0.000000e+00> : vector<16x128xf32>
    %3 = tpu.matmul %1, %2, %cst {dimension_numbers = #tpu.dot_dimension_numbers<[1], [0], [0], [1], [0, 0, 1, 1], [], []>} : vector<16x128xbf16>, vector<128x128xbf16>, vector<16x128xf32> -> vector<16x128xf32>
    %c0_4 = arith.constant 0 : index
    %c0_5 = arith.constant 0 : index
    %4 = vector.load %arg4[%c0_4, %c0_5] : memref<1x128xf32, #tpu.memory_space<vmem>>, vector<1x128xf32>
    %5 = vector.broadcast %4 : vector<1x128xf32> to vector<16x128xf32>
    %6 = arith.addf %3, %5 : vector<16x128xf32>
    %cst_6 = arith.constant 0.000000e+00 : f32
    %7 = vector.broadcast %cst_6 : f32 to vector<16x128xf32>
    %8 = arith.maximumf %6, %7 : vector<16x128xf32>
    %9 = arith.truncf %8 : vector<16x128xf32> to vector<16x128xbf16>
    %c0_7 = arith.constant 0 : index
    %c0_8 = arith.constant 0 : index
    %10 = vector.load %arg5[%c0_7, %c0_8] : memref<128x128xbf16, #tpu.memory_space<vmem>>, vector<128x128xbf16>
    %cst_9 = arith.constant dense<0.000000e+00> : vector<16x128xf32>
    %11 = tpu.matmul %9, %10, %cst_9 {dimension_numbers = #tpu.dot_dimension_numbers<[1], [0], [0], [1], [0, 0, 1, 1], [], []>} : vector<16x128xbf16>, vector<128x128xbf16>, vector<16x128xf32> -> vector<16x128xf32>
    %12 = vector.shape_cast %11 : vector<16x128xf32> to vector<1x16x128xf32>
    %c0_10 = arith.constant 0 : index
    %c0_11 = arith.constant 0 : index
    %c0_12 = arith.constant 0 : index
    %13 = vector.load %arg2[%c0_10, %c0_11, %c0_12] : memref<1x16x16xbf16, #tpu.memory_space<vmem>>, vector<1x16x16xbf16>
    %14 = arith.extf %13 : vector<1x16x16xbf16> to vector<1x16x16xf32>
    %cst_13 = arith.constant dense<0.000000e+00> : vector<1x16xf32>
    %15 = vector.multi_reduction <add>, %14, %cst_13 [2] : vector<1x16x16xf32> to vector<1x16xf32>
    %16 = vector.shape_cast %15 : vector<1x16xf32> to vector<1x16x1xf32>
    %cst_14 = arith.constant 0.000000e+00 : f32
    %17 = vector.broadcast %cst_14 : f32 to vector<1x16x1xf32>
    %18 = arith.cmpf ogt, %16, %17 : vector<1x16x1xf32>
    %19 = math.rsqrt %16 : vector<1x16x1xf32>
    %cst_15 = arith.constant 0.000000e+00 : f32
    %20 = vector.broadcast %cst_15 : f32 to vector<1x16x1xf32>
    %21 = arith.select %18, %19, %20 : vector<1x16x1xi1>, vector<1x16x1xf32>
    %22 = vector.broadcast %21 : vector<1x16x1xf32> to vector<1x16x128xf32>
    %23 = arith.mulf %12, %22 : vector<1x16x128xf32>
    %24 = arith.truncf %23 : vector<1x16x128xf32> to vector<1x16x128xbf16>
    %cst_16 = arith.constant dense<0.000000e+00> : vector<1x16x128xf32>
    %25 = tpu.matmul %13, %24, %cst_16 {dimension_numbers = #tpu.dot_dimension_numbers<[2], [1], [1], [2], [0, 0, 0, 1, 1, 2], [0], [0]>} : vector<1x16x16xbf16>, vector<1x16x128xbf16>, vector<1x16x128xf32> -> vector<1x16x128xf32>
    %26 = vector.broadcast %21 : vector<1x16x1xf32> to vector<1x16x128xf32>
    %27 = arith.mulf %25, %26 : vector<1x16x128xf32>
    %c0_17 = arith.constant 0 : index
    %c0_18 = arith.constant 0 : index
    %28 = vector.load %arg6[%c0_17, %c0_18] : memref<1x128xf32, #tpu.memory_space<vmem>>, vector<1x128xf32>
    %29 = vector.shape_cast %28 : vector<1x128xf32> to vector<1x1x128xf32>
    %30 = vector.broadcast %29 : vector<1x1x128xf32> to vector<1x16x128xf32>
    %31 = arith.addf %27, %30 : vector<1x16x128xf32>
    %c0_19 = arith.constant 0 : index
    %c0_20 = arith.constant 0 : index
    %c0_21 = arith.constant 0 : index
    %32 = vector.load %arg7[%c0_19, %c0_20, %c0_21] : memref<1x16x128xf32, #tpu.memory_space<vmem>>, vector<1x16x128xf32>
    tpu.vector_store %arg7[%c0_19, %c0_20, %c0_21], %31 {strides = array<i32>} : memref<1x16x128xf32, #tpu.memory_space<vmem>>, vector<1x16x128xf32>,
    return
  }
  func.func @transform_0(%arg0: i32) -> (i32, i32, i32) {
    %c0_i32 = arith.constant 0 : i32
    %c0_i32_0 = arith.constant 0 : i32
    %c0_i32_1 = arith.constant 0 : i32
    return %arg0, %c0_i32, %c0_i32_0 : i32, i32, i32
  }
  func.func @transform_1(%arg0: i32) -> (i32, i32, i32) {
    %c0_i32 = arith.constant 0 : i32
    %c0_i32_0 = arith.constant 0 : i32
    %c0_i32_1 = arith.constant 0 : i32
    return %arg0, %c0_i32, %c0_i32_0 : i32, i32, i32
  }
  func.func @transform_2(%arg0: i32) -> (i32, i32) {
    %c0_i32 = arith.constant 0 : i32
    %c0_i32_0 = arith.constant 0 : i32
    %c0_i32_1 = arith.constant 0 : i32
    return %c0_i32, %c0_i32_0 : i32, i32
  }
  func.func @transform_3(%arg0: i32) -> (i32, i32) {
    %c0_i32 = arith.constant 0 : i32
    %c0_i32_0 = arith.constant 0 : i32
    %c0_i32_1 = arith.constant 0 : i32
    return %c0_i32, %c0_i32_0 : i32, i32
  }
  func.func @transform_4(%arg0: i32) -> (i32, i32) {
    %c0_i32 = arith.constant 0 : i32
    %c0_i32_0 = arith.constant 0 : i32
    %c0_i32_1 = arith.constant 0 : i32
    return %c0_i32, %c0_i32_0 : i32, i32
  }
  func.func @transform_5(%arg0: i32) -> (i32, i32) {
    %c0_i32 = arith.constant 0 : i32
    %c0_i32_0 = arith.constant 0 : i32
    %c0_i32_1 = arith.constant 0 : i32
    return %c0_i32, %c0_i32_0 : i32, i32
  }
  func.func @transform_6(%arg0: i32) -> (i32, i32, i32) {
    %c0_i32 = arith.constant 0 : i32
    %c0_i32_0 = arith.constant 0 : i32
    %c0_i32_1 = arith.constant 0 : i32
    return %arg0, %c0_i32, %c0_i32_0 : i32, i32, i32
  }
}

</mosaic_0001>

<bundles_post_ra>
// kernel: tpu_custom_call.1
= control target key start
LH: loop header
LB: loop body
LE: loop exit
PB: predicated region body
PF: predicated region fallthrough
CT: control target
= control target key end

     0   :  { %11 = vsyncpa [#allocation3], 0  ;;  %s792_s0 = inlined_call_operand.hbm [shape: bf16[1,16,128], index: 0, kind: input, shape index: {}]   ;;  %s793_s1 = inlined_call_operand.hbm [shape: bf16[1,16,16], index: 1, kind: input, shape index: {}]   ;;  %s794_s2 = inlined_call_operand.hbm [shape: bf16[128,128], index: 2, kind: input, shape index: {}]   ;;  %s795_s3 = inlined_call_operand.vmem [shape: f32[1,128], index: 3, kind: input, shape index: {}]   ;;  %s796_s4 = inlined_call_operand.hbm [shape: bf16[128,128], index: 4, kind: input, shape index: {}]   ;;  %s797_s5 = inlined_call_operand.vmem [shape: f32[1,128], index: 5, kind: input, shape index: {}]   ;;  %s798_s6 = inlined_call_operand.hbm [shape: f32[1,16,128], index: 6, kind: output, shape index: {}]  }
   0x1   :  { %12 = vsyncpa [#allocation6], 0 }
   0x2   :  { %13 = vsyncpa [#allocation9], 0 }
   0x3   :  { %14 = vsyncpa [#allocation4], 0  ;;  %s648_s21 = smov [#allocation5]   ;;  %s649_s23 = smov [#allocation2]  }
   0x4   :  { %s32_s22 = sshll.u32 %s648_s21, 4  ;;  %s20_s24 = sshll.u32 %s649_s23, 4  ;;  %s33_s22 = int_to_ptr.vmem [resolvable:$true] %s32_s22  ;;  %s694_s24 = int_to_ptr.vmem [resolvable:$true] %s20_s24 }
   0x5   :  { %s530_s27 = scalar_lea.hbm %s793_s1, 128 }
   0x6   :  { %p531_p0 = scmp.ne.s32.totalorder %s793_s1, %s530_s27  ;;  %p534_p1 = scmp.lt.u32.totalorder %s530_s27, %s793_s1 }
   0x8   :  { %p536_p2 = pnand %p534_p1, %p531_p0 }
   0xa   :  { %539 = shalt.err (!%p536_p2)
}
   0xb   :  { %s540_s8 = scalar_lea.vmem %s33_s22, 128  ;;  %p545_p4 = scmp.lt.s32.totalorder %s33_s22, %s33_s22 }
   0xc   :  { %p541_p3 = scmp.ne.s32.totalorder %s33_s22, %s540_s8  ;;  %p546_p5 = scmp.lt.s32.totalorder %s540_s8, %s540_s8 }
   0xe   :  { %p547_p6 = por %p546_p5, %p545_p4 }
  0x10   :  { %p548_p7 = pnand %p547_p6, %p541_p3 }
  0x12   :  { %551 = shalt.err (!%p548_p7)
}
  0x13   :  { %s650_s9 = smov 64   ;;  %s651_s10 = smov 4  }
  0x14   :  { %38 = dma.hbm_to_vmem [thread:$0]  %s793_s1, 128, %s33_s22, [#allocation6], %s650_s9, %s650_s9, %s651_s10  }
  0x15   :  { %s552_s15 = scalar_lea.hbm %s792_s0, 128 }
  0x16   :  { %p553_p8 = scmp.ne.s32.totalorder %s792_s0, %s552_s15  ;;  %p556_p9 = scmp.lt.u32.totalorder %s552_s15, %s792_s0 }
  0x18   :  { %p558_p10 = pnand %p556_p9, %p553_p8 }
  0x1a   :  { %561 = shalt.err (!%p558_p10)
}
  0x1b   :  { %s562_s20 = scalar_lea.vmem %s694_s24, 128  ;;  %p567_p12 = scmp.lt.s32.totalorder %s694_s24, %s694_s24 }
  0x1c   :  { %p563_p11 = scmp.ne.s32.totalorder %s694_s24, %s562_s20  ;;  %p568_p13 = scmp.lt.s32.totalorder %s562_s20, %s562_s20 }
  0x1e   :  { %p569_p0 = por %p568_p13, %p567_p12 }
  0x20   :  { %p570_p1 = pnand %p569_p0, %p563_p11 }
  0x22   :  { %573 = shalt.err (!%p570_p1)
}
  0x23   :  { %26 = dma.hbm_to_vmem [thread:$0]  %s792_s0, 128, %s694_s24, [#allocation3], %s650_s9, %s650_s9, %s651_s10  }
  0x24   :  { %s652_s22 = smov [#allocation7]   ;;  %s653_s25 = smov [#allocation8]  }
  0x25   :  { %s44_s23 = sshll.u32 %s652_s22, 4  ;;  %s58_s26 = sshll.u32 %s653_s25, 4  ;;  %s45_s23 = int_to_ptr.vmem [resolvable:$true] %s44_s23  ;;  %s731_s26 = int_to_ptr.vmem [resolvable:$true] %s58_s26 }
  0x26   :  { %s574_s29 = scalar_lea.hbm %s794_s2, 1024 }
  0x27   :  { %p575_p2 = scmp.ne.s32.totalorder %s794_s2, %s574_s29  ;;  %p578_p3 = scmp.lt.u32.totalorder %s574_s29, %s794_s2 }
  0x29   :  { %p580_p4 = pnand %p578_p3, %p575_p2 }
  0x2b   :  { %583 = shalt.err (!%p580_p4)
}
  0x2c   :  { %s584_s0 = scalar_lea.vmem %s45_s23, 1024  ;;  %p589_p6 = scmp.lt.s32.totalorder %s45_s23, %s45_s23 }
  0x2d   :  { %p585_p5 = scmp.ne.s32.totalorder %s45_s23, %s584_s0  ;;  %p590_p7 = scmp.lt.s32.totalorder %s584_s0, %s584_s0 }
  0x2f   :  { %p591_p8 = por %p590_p7, %p589_p6 }
  0x31   :  { %p592_p9 = pnand %p591_p8, %p585_p5 }
  0x33   :  { %595 = shalt.err (!%p592_p9)
}
  0x34   :  { %50 = dma.hbm_to_vmem [thread:$0]  %s794_s2, 1024, %s45_s23, [#allocation6], %s650_s9, %s650_s9, %s651_s10  }
  0x35   :  { %s596_s15 = scalar_lea.hbm %s796_s4, 1024 }
  0x36   :  { %p597_p10 = scmp.ne.s32.totalorder %s796_s4, %s596_s15  ;;  %p600_p11 = scmp.lt.u32.totalorder %s596_s15, %s796_s4 }
  0x38   :  { %p602_p12 = pnand %p600_p11, %p597_p10 }
  0x3a   :  { %605 = shalt.err (!%p602_p12)
}
  0x3b   :  { %s606_s20 = scalar_lea.vmem %s731_s26, 1024  ;;  %p611_p0 = scmp.lt.s32.totalorder %s731_s26, %s731_s26 }
  0x3c   :  { %p607_p13 = scmp.ne.s32.totalorder %s731_s26, %s606_s20  ;;  %p612_p1 = scmp.lt.s32.totalorder %s606_s20, %s606_s20 }
  0x3e   :  { %p613_p2 = por %p612_p1, %p611_p0 }
  0x40   :  { %p614_p3 = pnand %p613_p2, %p607_p13 }
  0x42   :  { %617 = shalt.err (!%p614_p3)
}
  0x43   :  { %64 = dma.hbm_to_vmem [thread:$0]  %s796_s4, 1024, %s731_s26, [#allocation9], %s650_s9, %s650_s9, %s651_s10  }
  0x44   :  { %640 = dma.done.wait [#allocation3], 128  }
  0x45   :  { %641 = vsyncadd [#allocation3], 4294967168 }
  0x46   :  { %642 = dma.done.wait [#allocation6], 1152  }
  0x47   :  { %643 = vsyncadd [#allocation6], 4294966144 }
  0x48   :  { %644 = dma.done.wait [#allocation9], 1024  }
  0x49   :  { %645 = vsyncadd [#allocation9], 4294966272  ;;  %v654_v0 = vmov 0.0   ;;  %vm655_vm0 = vmmov 0   ;;  %v507_v1 = vld [vmem:[#allocation7] sm:$0xff]   ;;  %v508_v2 = vld [vmem:[#allocation7 + $0x8] sm:$0xff]  }
  0x4a   :  { %450 = vmatprep.subr.bf16.mxu0 %v654_v0  ;;  %466 = vmatprep.mubr.msk.bf16.mxu0 %vm655_vm0, %v654_v0  ;;  %v509_v3 = vld [vmem:[#allocation7 + $0x10] sm:$0xff]   ;;  %v516_v4 = vld [vmem:[#allocation8] sm:$0xff]   ;;  %v510_v5 = vld [vmem:[#allocation7 + $0x18] sm:$0xff]   ;;  %vm312_vm1 = vcmask 130048   ;;  %s656_s21 = smov [#allocation10]  }
  0x4b   :  { %470 = vmatprep.subr.bf16.mxu1 %v654_v0  ;;  %486 = vmatprep.mubr.msk.bf16.mxu1 %vm655_vm0, %v654_v0  ;;  %v517_v6 = vld [vmem:[#allocation8 + $0x8] sm:$0xff]   ;;  %v511_v7 = vld [vmem:[#allocation7 + $0x20] sm:$0xff]   ;;  %v518_v8 = vld [vmem:[#allocation8 + $0x10] sm:$0xff]   ;;  %s395_s22 = sshll.u32 %s656_s21, 4  ;;  %s396_s22 = int_to_ptr.vmem [resolvable:$true] %s395_s22 }
  0x4c   :  { %451 = vmatpush3.bf16.msra.mxu0 %v507_v1  ;;  %471 = vmatpush3.bf16.msra.mxu1 %v516_v4  ;;  %v512_v9 = vld [vmem:[#allocation7 + $0x28] sm:$0xff]   ;;  %v519_v10 = vld [vmem:[#allocation8 + $0x18] sm:$0xff]   ;;  %v513_v11 = vld [vmem:[#allocation7 + $0x30] sm:$0xff]   ;;  %s618_s23 = scalar_lea.vmem %s396_s22, 256  ;;  %p623_p5 = scmp.lt.s32.totalorder %s396_s22, %s396_s22 }
  0x4d   :  { %452 = vmatprep.subr.bf16.mxu0 %v654_v0  ;;  %472 = vmatprep.subr.bf16.mxu1 %v654_v0  ;;  %v520_v12 = vld [vmem:[#allocation8 + $0x20] sm:$0xff]   ;;  %v514_v13 = vld [vmem:[#allocation7 + $0x38] sm:$0xff]   ;;  %v521_v14 = vld [vmem:[#allocation8 + $0x28] sm:$0xff]   ;;  %p619_p4 = scmp.ne.s32.totalorder %s396_s22, %s618_s23  ;;  %p624_p6 = scmp.lt.s32.totalorder %s618_s23, %s618_s23 }
  0x4e   :  { %v515_v15 = vld [vmem:[#allocation2] sm:$0xff]   ;;  %v523_v17 = vld [vmem:[#allocation8 + $0x38] sm:$0xff]  }
  0x4f   :  { %v522_v16 = vld [vmem:[#allocation8 + $0x30] sm:$0xff]   ;;  %v308_v18 = vld [vmem:[#allocation5] sm:$0xff]   ;;  %p625_p7 = por %p624_p6, %p623_p5 }
  0x50   :  { %453 = vmatpush3.bf16.msra.mxu0 %v508_v2  ;;  %473 = vmatpush3.bf16.msra.mxu1 %v517_v6  ;;  %v310_v19 = vunpack.c.l.bf16 %v308_v18  ;;  %v311_v20 = vunpack.c.h.bf16 %v308_v18  ;;  %v409_v23 = vld [vmem:[%s795_s3] ss:$0 sm:$0xff] }
  0x51   :  { %454 = vmatprep.subr.bf16.mxu0 %v654_v0  ;;  %474 = vmatprep.subr.bf16.mxu1 %v654_v0  ;;  %v429_v47 = vld [vmem:[%s797_s5] ss:$0 sm:$0xff]  ;;  %p626_p8 = pnand %p625_p7, %p619_p4 }
  0x52   :  { %v313_v21 = vsel %vm312_vm1, %v310_v19, 0.0  ;;  %v316_v22 = vsel %vm312_vm1, %v311_v20, 0.0 }
  0x53   :  { %314 = vadd.xlane.f32.xlu0 %v313_v21 }
  0x54   :  { %455 = vmatpush3.bf16.msra.mxu0 %v509_v3  ;;  %475 = vmatpush3.bf16.msra.mxu1 %v518_v8 }
  0x55   :  { %456 = vmatprep.subr.bf16.mxu0 %v654_v0  ;;  %476 = vmatprep.subr.bf16.mxu1 %v654_v0 }
  0x57   :  { %317 = vadd.xlane.f32.xlu0 %v316_v22 }
  0x58   :  { %457 = vmatpush3.bf16.msra.mxu0 %v510_v5  ;;  %477 = vmatpush3.bf16.msra.mxu1 %v519_v10 }
  0x59   :  { %458 = vmatprep.subr.bf16.mxu0 %v654_v0  ;;  %478 = vmatprep.subr.bf16.mxu1 %v654_v0 }
  0x5c   :  { %459 = vmatpush3.bf16.msra.mxu0 %v511_v7  ;;  %479 = vmatpush3.bf16.msra.mxu1 %v520_v12 }
  0x5d   :  { %460 = vmatprep.subr.bf16.mxu0 %v654_v0  ;;  %480 = vmatprep.subr.bf16.mxu1 %v654_v0 }
  0x60   :  { %461 = vmatpush3.bf16.msra.mxu0 %v512_v9  ;;  %481 = vmatpush3.bf16.msra.mxu1 %v521_v14 }
  0x61   :  { %462 = vmatprep.subr.bf16.mxu0 %v654_v0  ;;  %482 = vmatprep.subr.bf16.mxu1 %v654_v0 }
  0x64   :  { %463 = vmatpush3.bf16.msra.mxu0 %v513_v11  ;;  %483 = vmatpush3.bf16.msra.mxu1 %v522_v16 }
  0x65   :  { %464 = vmatprep.subr.bf16.mxu0 %v654_v0  ;;  %484 = vmatprep.subr.bf16.mxu1 %v654_v0 }
  0x68   :  { %465 = vmatpush3.bf16.msra.mxu0 %v514_v13  ;;  %485 = vmatpush3.bf16.msra.mxu1 %v523_v17 }
  0x69   :  { %490 = vmatprep.subr.bf16.mxu0 %v654_v0 }
  0x6b   :  { %467 = vmatmul.mubr.bf16.vlgmr.msra.gmra.mrb[0].mxu0 %v515_v15 }
  0x6c   :  { %492 = vmatprep.mubr.msk.bf16.mxu0 %vm655_vm0, %v654_v0 }
  0xe0   :  { %v315_v33 = vpop.xlane.xlu0 %314 }
  0xe1   :  { %526 = vrsqrt.f32 %v315_v33  ;;  %vm319_vm2 = vcmp.gt.f32.partialorder %v315_v33, 0.0 }
  0xe4   :  { %v318_v34 = vpop.xlane.xlu0 %317 }
  0xe5   :  { %528 = vrsqrt.f32 %v318_v34  ;;  %vm320_vm3 = vcmp.gt.f32.partialorder %v318_v34, 0.0 }
  0xeb   :  { %v527_v35 = vpop.eup %526 }
  0xec   :  { %v323_v39 = vsel %vm319_vm2, %v527_v35, 0.0 }
  0xef   :  { %v529_v36 = vpop.eup %528 }
  0xf0   :  { %v324_v41 = vsel %vm320_vm3, %v529_v36, 0.0 }
 0x13e   :  { %v193_v24 = vpop.f32.mrb[0].mxu0 }
 0x13f   :  { %v194_v25 = vadd.f32 %v409_v23, %v193_v24  ;;  %v468_v26 = vpop.f32.mrb[1].mxu0 }
 0x140   :  { %v196_v27 = vpop.f32.mrb[2].mxu0 }
 0x141   :  { %v197_v28 = vadd.f32 %v409_v23, %v196_v27  ;;  %v469_v29 = vpop.f32.mrb[3].mxu0  ;;  %v200_v30 = vmax.f32 %v194_v25, 0.0 }
 0x143   :  { %v201_v31 = vmax.f32 %v197_v28, 0.0 }
 0x145   :  { %v202_v32 = vpack.c.bf16 %v201_v31, %v200_v30 }
 0x147   :  { %487 = vmatmul.mubr.bf16.vlgmr.msra.gmra.mrb[0].mxu1 %v202_v32 }
 0x21a   :  { %v301_v37 = vpop.f32.mrb[0].mxu1 }
 0x21b   :  { %v488_v38 = vpop.f32.mrb[1].mxu1  ;;  %v325_v42 = vmul.f32 %v323_v39, %v301_v37 }
 0x21c   :  { %v304_v40 = vpop.f32.mrb[2].mxu1 }
 0x21d   :  { %v326_v43 = vmul.f32 %v324_v41, %v304_v40  ;;  %v489_v44 = vpop.f32.mrb[3].mxu1 }
 0x21f   :  { %v327_v45 = vpack.c.bf16 %v326_v43, %v325_v42 }
 0x221   :  { %491 = vmatpush3.bf16.msra.mxu0 %v327_v45 }
 0x224   :  { %493 = vmatmul.mubr.msk.bf16.vlgmr.msra.gmra.mrb[4].mxu0 %vm312_vm1, %v308_v18 }
 0x2f7   :  { %v370_v46 = vpop.f32.mrb[4].mxu0 }
 0x2f8   :  { %v377_v48 = vmul.f32 %v370_v46, %v323_v39  ;;  %v494_v49 = vpop.f32.mrb[5].mxu0 }
 0x2f9   :  { %v373_v50 = vpop.f32.mrb[6].mxu0 }
 0x2fa   :  { %v386_v51 = vadd.f32 %v429_v47, %v377_v48  ;;  %v378_v52 = vmul.f32 %v373_v50, %v324_v41  ;;  %v495_v53 = vpop.f32.mrb[7].mxu0 }
 0x2fc   :  { %388 = vst [vmem:[#allocation10] sm:$0xff] %v386_v51  ;;  %v387_v54 = vadd.f32 %v429_v47, %v378_v52 }
 0x2fe   :  { %389 = vst [vmem:[#allocation10 + $0x8] sm:$0xff] %v387_v54 }
 0x2ff   :  { %629 = shalt.err (!%p626_p8)
}
 0x300   :  { %s630_s26 = scalar_lea.hbm %s798_s6, 256 }
 0x301   :  { %p631_p9 = scmp.ne.s32.totalorder %s798_s6, %s630_s26  ;;  %p634_p10 = scmp.lt.u32.totalorder %s630_s26, %s798_s6 }
 0x303   :  { %p636_p11 = pnand %p634_p10, %p631_p9 }
 0x305   :  { %639 = shalt.err (!%p636_p11)
}
 0x306   :  { %s657_s7 = smov 128   ;;  %s658_s8 = smov 8  }
 0x307   :  { %401 = dma.vmem_to_hbm [thread:$0]  %s396_s22, 256, %s798_s6, [#allocation4], %s657_s7, %s657_s7, %s658_s8  }
 0x308   :  { %646 = dma.done.wait [#allocation4], 256  }
 0x309   :  { %647 = vsyncadd [#allocation4], 4294967040 }
 0x30a   :  { %405 = vsyncpa [#allocation3], 1 }
 0x30b   :  { %406 = vsyncpa [#allocation6], 1 }
 0x30c   :  { %407 = vsyncpa [#allocation9], 1 }
 0x30d   :  { %408 = vsyncpa [#allocation4], 1 }

</bundles_post_ra>
